<compile_context>
chip_gen: v6e
topology: v6e:2x2x1
jax: 0.10.0
libtpu: 0.0.40
codegen_flags: <defaults>
</compile_context>

<pallas_src>
import jax
import jax.numpy as jnp
from jax.experimental import pallas as pl
from jax.experimental.pallas import tpu as pltpu

LANE = 128  # TPU lane width


def _mlp_kernel(x_ref, w1_ref, b1_ref, w2_ref, b2_ref, o_ref):
    # x_ref:  (TM, 128)   padded input tile (batch rows x padded features)
    # w1_ref: (128, 128)  padded W1 (in x hidden), VMEM-resident across grid
    # b1_ref: (1, 128)    padded b1
    # w2_ref: (1, 128)    padded w2 as a row vector
    # b2_ref: (1, 1)      scalar bias
    # o_ref:  (TM, 128)   lane-dense output block (result broadcast over lanes)

    # Layer 1 on the MXU: (TM,128) @ (128,128) -> (TM,128), then bias + ReLU on VPU.
    h = jnp.dot(x_ref[...], w1_ref[...], preferred_element_type=jnp.float32)
    h = jnp.maximum(h + b1_ref[...], 0.0)

    # Layer 2 on VPU + XLU: elementwise multiply with the w2 row, reduce over lanes.
    # (An MXU matmul to a single output column would be ~all padding.)
    y = jnp.sum(h * w2_ref[...], axis=-1, keepdims=True) + b2_ref[...]   # (TM, 1)
    y = jax.nn.sigmoid(y)                                                # EUP

    # Lane-dense, unmasked store; wrapper slices column 0.
    o_ref[...] = jnp.broadcast_to(y, o_ref.shape).astype(o_ref.dtype)


def _round_up(n, m):
    return ((n + m - 1) // m) * m


def mlp_forward(x, w1, b1, w2, b2, *, tm_max=1024):
    """x: (B, 20) f32; w1: (20, 20); b1: (20,); w2: (20, 1); b2: (1,). Returns (B, 1)."""
    B, f_in = x.shape
    f_hid = w1.shape[1]

    # Batch tile: multiple of 8 sublanes, capped; pad batch to a tile multiple.
    tm = min(tm_max, _round_up(B, 8))
    b_pad = _round_up(B, tm)

    # One-time wrapper-side zero padding to lane width (exact for matmul+ReLU:
    # padded hidden units are relu(0 + 0) = 0 and their w2 entries are 0).
    x_p = jnp.zeros((b_pad, LANE), jnp.float32).at[:B, :f_in].set(x)
    w1_p = jnp.zeros((LANE, LANE), jnp.float32).at[:f_in, :f_hid].set(w1)
    b1_p = jnp.zeros((1, LANE), jnp.float32).at[0, :f_hid].set(b1)
    w2_p = jnp.zeros((1, LANE), jnp.float32).at[0, :f_hid].set(w2[:, 0])
    b2_p = b2.reshape(1, 1).astype(jnp.float32)

    grid = (b_pad // tm,)
    out_padded = pl.pallas_call(
        _mlp_kernel,
        out_shape=jax.ShapeDtypeStruct((b_pad, LANE), jnp.float32),
        grid=grid,
        in_specs=[
            pl.BlockSpec((tm, LANE), lambda i: (i, 0)),     # x: tiled over batch
            pl.BlockSpec((LANE, LANE), lambda i: (0, 0)),   # w1: resident
            pl.BlockSpec((1, LANE), lambda i: (0, 0)),      # b1: resident
            pl.BlockSpec((1, LANE), lambda i: (0, 0)),      # w2 row: resident
            pl.BlockSpec((1, 1), lambda i: (0, 0)),         # b2: resident
        ],
        out_specs=pl.BlockSpec((tm, LANE), lambda i: (i, 0)),
        compiler_params=pltpu.CompilerParams(
            dimension_semantics=("parallel",),  # megacore sharding on v7x
        ),
    )(x_p, w1_p, b1_p, w2_p, b2_p)

    # Undo the lane-dense padding: real result lives in column 0, rows [:B].
    return out_padded[:B, :1]


def reference_forward(x, w1, b1, w2, b2):
    h = jnp.maximum(x @ w1 + b1, 0.0)
    return jax.nn.sigmoid(h @ w2 + b2)


if __name__ == "__main__":
    key = jax.random.PRNGKey(0)
    kx, k1, kb1, k2, kb2 = jax.random.split(key, 5)

    batch = 8
    in_dim, hid_dim, out_dim = 20, 20, 1

    x = jax.random.normal(kx, (batch, in_dim), dtype=jnp.float32)
    # Deterministic parameter init (nn.Linear shapes, stored transposed as [in, out]).
    w1 = jax.random.normal(k1, (in_dim, hid_dim), dtype=jnp.float32) * 0.1
    b1 = jax.random.normal(kb1, (hid_dim,), dtype=jnp.float32) * 0.1
    w2 = jax.random.normal(k2, (hid_dim, out_dim), dtype=jnp.float32) * 0.1
    b2 = jax.random.normal(kb2, (out_dim,), dtype=jnp.float32) * 0.1

    out = mlp_forward(x, w1, b1, w2, b2)
    out = jax.block_until_ready(out)

    ref = reference_forward(x, w1, b1, w2, b2)
    assert out.shape == (batch, out_dim), out.shape
    assert jnp.allclose(out, ref, atol=1e-5, rtol=1e-5), (out, ref)

    print("KERNEL_OK")
</pallas_src>

<mosaic_0001>
module attributes {stable_mosaic.version = 11 : i64} {
  func.func @_mlp_kernel(%arg0: i32, %arg1: memref<8x128xf32, #tpu.memory_space<vmem>>, %arg2: memref<128x128xf32, #tpu.memory_space<vmem>>, %arg3: memref<1x128xf32, #tpu.memory_space<vmem>>, %arg4: memref<1x128xf32, #tpu.memory_space<vmem>>, %arg5: memref<1x1xf32, #tpu.memory_space<vmem>>, %arg6: memref<8x128xf32, #tpu.memory_space<vmem>>) attributes {dimension_semantics = [#tpu.dimension_semantics<parallel>], iteration_bounds = array<i64: 1>, scalar_prefetch = 0 : i64, scratch_operands = 0 : i64, tpu.core_type = #tpu.core_type<tc>, window_params = [{transform_indices = @transform_0, window_bounds = array<i64: 8, 128>}, {pipeline_mode = #tpu.pipeline_mode<synchronous>, transform_indices = @transform_1, window_bounds = array<i64: 128, 128>}, {pipeline_mode = #tpu.pipeline_mode<synchronous>, transform_indices = @transform_2, window_bounds = array<i64: 1, 128>}, {pipeline_mode = #tpu.pipeline_mode<synchronous>, transform_indices = @transform_3, window_bounds = array<i64: 1, 128>}, {pipeline_mode = #tpu.pipeline_mode<synchronous>, transform_indices = @transform_4, window_bounds = array<i64: 1, 1>}, {transform_indices = @transform_5, window_bounds = array<i64: 8, 128>}]} {
    %c0 = arith.constant 0 : index
    %c0_0 = arith.constant 0 : index
    %0 = vector.load %arg1[%c0, %c0_0] : memref<8x128xf32, #tpu.memory_space<vmem>>, vector<8x128xf32>
    %c0_1 = arith.constant 0 : index
    %c0_2 = arith.constant 0 : index
    %1 = vector.load %arg2[%c0_1, %c0_2] : memref<128x128xf32, #tpu.memory_space<vmem>>, vector<128x128xf32>
    %cst = arith.constant dense<0.000000e+00> : vector<8x128xf32>
    %2 = tpu.matmul %0, %1, %cst {dimension_numbers = #tpu.dot_dimension_numbers<[1], [0], [0], [1], [0, 0, 1, 1], [], []>} : vector<8x128xf32>, vector<128x128xf32>, vector<8x128xf32> -> vector<8x128xf32>
    %c0_3 = arith.constant 0 : index
    %c0_4 = arith.constant 0 : index
    %3 = vector.load %arg3[%c0_3, %c0_4] : memref<1x128xf32, #tpu.memory_space<vmem>>, vector<1x128xf32>
    %4 = vector.broadcast %3 : vector<1x128xf32> to vector<8x128xf32>
    %5 = arith.addf %2, %4 : vector<8x128xf32>
    %cst_5 = arith.constant 0.000000e+00 : f32
    %6 = vector.broadcast %cst_5 : f32 to vector<8x128xf32>
    %7 = arith.maximumf %5, %6 : vector<8x128xf32>
    %c0_6 = arith.constant 0 : index
    %c0_7 = arith.constant 0 : index
    %8 = vector.load %arg4[%c0_6, %c0_7] : memref<1x128xf32, #tpu.memory_space<vmem>>, vector<1x128xf32>
    %9 = vector.broadcast %8 : vector<1x128xf32> to vector<8x128xf32>
    %10 = arith.mulf %7, %9 : vector<8x128xf32>
    %cst_8 = arith.constant dense<0.000000e+00> : vector<8xf32>
    %11 = vector.multi_reduction <add>, %10, %cst_8 [1] : vector<8x128xf32> to vector<8xf32>
    %12 = vector.shape_cast %11 : vector<8xf32> to vector<8x1xf32>
    %c0_9 = arith.constant 0 : index
    %c0_10 = arith.constant 0 : index
    %13 = vector.load %arg5[%c0_9, %c0_10] : memref<1x1xf32, #tpu.memory_space<vmem>>, vector<1x1xf32>
    %14 = vector.broadcast %13 : vector<1x1xf32> to vector<8x1xf32>
    %15 = arith.addf %12, %14 : vector<8x1xf32>
    %16 = arith.negf %15 : vector<8x1xf32>
    %17 = math.exp %16 : vector<8x1xf32>
    %cst_11 = arith.constant 1.000000e+00 : f32
    %18 = vector.broadcast %cst_11 : f32 to vector<8x1xf32>
    %19 = arith.addf %18, %17 : vector<8x1xf32>
    %20 = arith.divf %18, %19 : vector<8x1xf32>
    %21 = vector.shape_cast %20 : vector<8x1xf32> to vector<8x1xf32>
    %22 = vector.broadcast %21 : vector<8x1xf32> to vector<8x128xf32>
    %c0_12 = arith.constant 0 : index
    %c0_13 = arith.constant 0 : index
    %23 = vector.load %arg6[%c0_12, %c0_13] : memref<8x128xf32, #tpu.memory_space<vmem>>, vector<8x128xf32>
    tpu.vector_store %arg6[%c0_12, %c0_13], %22 {strides = array<i32>} : memref<8x128xf32, #tpu.memory_space<vmem>>, vector<8x128xf32>,
    return
  }
  func.func @transform_0(%arg0: i32) -> (i32, i32) {
    %c0_i32 = arith.constant 0 : i32
    %c0_i32_0 = arith.constant 0 : i32
    return %arg0, %c0_i32 : i32, i32
  }
  func.func @transform_1(%arg0: i32) -> (i32, i32) {
    %c0_i32 = arith.constant 0 : i32
    %c0_i32_0 = arith.constant 0 : i32
    %c0_i32_1 = arith.constant 0 : i32
    return %c0_i32, %c0_i32_0 : i32, i32
  }
  func.func @transform_2(%arg0: i32) -> (i32, i32) {
    %c0_i32 = arith.constant 0 : i32
    %c0_i32_0 = arith.constant 0 : i32
    %c0_i32_1 = arith.constant 0 : i32
    return %c0_i32, %c0_i32_0 : i32, i32
  }
  func.func @transform_3(%arg0: i32) -> (i32, i32) {
    %c0_i32 = arith.constant 0 : i32
    %c0_i32_0 = arith.constant 0 : i32
    %c0_i32_1 = arith.constant 0 : i32
    return %c0_i32, %c0_i32_0 : i32, i32
  }
  func.func @transform_4(%arg0: i32) -> (i32, i32) {
    %c0_i32 = arith.constant 0 : i32
    %c0_i32_0 = arith.constant 0 : i32
    %c0_i32_1 = arith.constant 0 : i32
    return %c0_i32, %c0_i32_0 : i32, i32
  }
  func.func @transform_5(%arg0: i32) -> (i32, i32) {
    %c0_i32 = arith.constant 0 : i32
    %c0_i32_0 = arith.constant 0 : i32
    return %arg0, %c0_i32 : i32, i32
  }
}

</mosaic_0001>

<bundles_post_ra>
// kernel: tpu_custom_call.1
= control target key start
LH: loop header
LB: loop body
LE: loop exit
PB: predicated region body
PF: predicated region fallthrough
CT: control target
= control target key end

     0   :  { %s381_s0 = inlined_call_operand.hbm [shape: f32[8,128], index: 0, kind: input, shape index: {}]   ;;  %s382_s1 = inlined_call_operand.hbm [shape: f32[128,128], index: 1, kind: input, shape index: {}]   ;;  %s383_s2 = inlined_call_operand.vmem [shape: f32[1,128], index: 2, kind: input, shape index: {}]   ;;  %s384_s3 = inlined_call_operand.vmem [shape: f32[1,128], index: 3, kind: input, shape index: {}]   ;;  %s385_s4 = inlined_call_operand.<no memory space> [shape: f32[1,1], index: 4, kind: input, shape index: {}]   ;;  %s386_s5 = inlined_call_operand.hbm [shape: f32[8,128], index: 5, kind: output, shape index: {}]  }
   0x1   :  { %v10_v0 = vstv %s385_s4 }
   0x2   :  { %11 = vst [vmem:[#allocation2] sm:$0x1] %v10_v0 }
   0x3   :  { %12 = vsyncpa [#allocation4], 0 }
   0x4   :  { %13 = vsyncpa [#allocation7], 0 }
   0x5   :  { %14 = vsyncpa [#allocation5], 0  ;;  %s325_s20 = smov [#allocation3]   ;;  %s326_s22 = smov [#allocation6]  }
   0x6   :  { %s21_s21 = sshll.u32 %s325_s20, 4  ;;  %s30_s23 = sshll.u32 %s326_s22, 4  ;;  %s22_s21 = int_to_ptr.vmem [resolvable:$true] %s21_s21  ;;  %s31_s23 = int_to_ptr.vmem [resolvable:$true] %s30_s23 }
   0x7   :  { %s267_s24 = scalar_lea.vmem %s22_s21, 128  ;;  %p272_p1 = scmp.lt.s32.totalorder %s22_s21, %s22_s21 }
   0x8   :  { %p268_p0 = scmp.ne.s32.totalorder %s22_s21, %s267_s24  ;;  %p273_p2 = scmp.lt.s32.totalorder %s267_s24, %s267_s24 }
   0xa   :  { %p274_p3 = por %p273_p2, %p272_p1 }
   0xc   :  { %p275_p4 = pnand %p274_p3, %p268_p0 }
   0xe   :  { %278 = shalt.err (!%p275_p4)
}
   0xf   :  { %24 = dma.hbm_to_vmem [thread:$0]  %s381_s0, 128, %s22_s21, [#allocation4]  }
  0x10   :  { %s287_s4 = scalar_lea.vmem %s31_s23, 2048  ;;  %p292_p6 = scmp.lt.s32.totalorder %s31_s23, %s31_s23 }
  0x11   :  { %p288_p5 = scmp.ne.s32.totalorder %s31_s23, %s287_s4  ;;  %p293_p7 = scmp.lt.s32.totalorder %s287_s4, %s287_s4 }
  0x13   :  { %p294_p8 = por %p293_p7, %p292_p6 }
  0x15   :  { %p295_p9 = pnand %p294_p8, %p288_p5 }
  0x17   :  { %298 = shalt.err (!%p295_p9)
}
  0x18   :  { %s327_s27 = smov 128   ;;  %s328_s28 = smov 8  }
  0x19   :  { %36 = dma.hbm_to_vmem [thread:$0]  %s382_s1, 2048, %s31_s23, [#allocation7], %s327_s27, %s327_s27, %s328_s28  }
  0x1a   :  { %319 = dma.done.wait [#allocation4], 128  }
  0x1b   :  { %320 = vsyncadd [#allocation4], 4294967168 }
  0x1c   :  { %321 = dma.done.wait [#allocation7], 2048  }
  0x1d   :  { %322 = vsyncadd [#allocation7], 4294965248  ;;  %v329_v1 = vmov 0.0   ;;  %vm330_vm0 = vmmov 0   ;;  %v65_v2 = vld [vmem:[#allocation6 + $0x78] sm:$0xff]  ;;  %v64_v3 = vld [vmem:[#allocation6 + $0x70] sm:$0xff] }
  0x1e   :  { %211 = vmatprep.subr.mxu0 %v329_v1  ;;  %243 = vmatprep.mubr.msk.f32.mxu0 %vm330_vm0, %v329_v1  ;;  %v63_v4 = vld [vmem:[#allocation6 + $0x68] sm:$0xff]  ;;  %v62_v5 = vld [vmem:[#allocation6 + $0x60] sm:$0xff]  ;;  %v61_v6 = vld [vmem:[#allocation6 + $0x58] sm:$0xff]  ;;  %v331_v26 = vmov 0  }
  0x1f   :  { %212 = vmatpush3.msra.mxu0 %v65_v2  ;;  %v60_v7 = vld [vmem:[#allocation6 + $0x50] sm:$0xff]  ;;  %v59_v8 = vld [vmem:[#allocation6 + $0x48] sm:$0xff]  ;;  %v58_v9 = vld [vmem:[#allocation6 + $0x40] sm:$0xff]  ;;  %254 = vset.pattern.permute.xlu0 %v331_v26 }
  0x20   :  { %213 = vmatprep.subr.mxu0 %v329_v1  ;;  %v57_v10 = vld [vmem:[#allocation6 + $0x38] sm:$0xff]  ;;  %v56_v11 = vld [vmem:[#allocation6 + $0x30] sm:$0xff]  ;;  %v55_v12 = vld [vmem:[#allocation6 + $0x28] sm:$0xff] }
  0x21   :  { %214 = vmatpush3.msra.mxu0 %v64_v3  ;;  %v54_v13 = vld [vmem:[#allocation6 + $0x20] sm:$0xff]  ;;  %v53_v14 = vld [vmem:[#allocation6 + $0x18] sm:$0xff]  ;;  %v52_v15 = vld [vmem:[#allocation6 + $0x10] sm:$0xff] }
  0x22   :  { %215 = vmatprep.subr.mxu0 %v329_v1  ;;  %v51_v16 = vld [vmem:[#allocation6 + $0x8] sm:$0xff]  ;;  %v50_v17 = vld [vmem:[#allocation6] sm:$0xff]  ;;  %v49_v18 = vld [vmem:[#allocation3] sm:$0xff] }
  0x23   :  { %216 = vmatpush3.msra.mxu0 %v63_v4  ;;  %v190_v19 = vld [vmem:[%s383_s2] ss:$0 sm:$0xff]  ;;  %s332_s2 = smov [#allocation8]  }
  0x24   :  { %217 = vmatprep.subr.mxu0 %v329_v1  ;;  %v191_v23 = vld [vmem:[%s384_s3] ss:$0 sm:$0xff]  ;;  %s180_s8 = sshll.u32 %s332_s2, 4  ;;  %s181_s8 = int_to_ptr.vmem [resolvable:$true] %s180_s8 }
  0x25   :  { %218 = vmatpush3.msra.mxu0 %v62_v5  ;;  %v192_v27 = vld [vmem:[#allocation2] ss:$0 sm:$0xff]  ;;  %s299_s3 = scalar_lea.vmem %s181_s8, 128  ;;  %p304_p11 = scmp.lt.s32.totalorder %s181_s8, %s181_s8 }
  0x26   :  { %219 = vmatprep.subr.mxu0 %v329_v1  ;;  %p300_p10 = scmp.ne.s32.totalorder %s181_s8, %s299_s3  ;;  %p305_p12 = scmp.lt.s32.totalorder %s299_s3, %s299_s3 }
  0x27   :  { %220 = vmatpush3.msra.mxu0 %v61_v6 }
  0x28   :  { %221 = vmatprep.subr.mxu0 %v329_v1  ;;  %p306_p13 = por %p305_p12, %p304_p11 }
  0x29   :  { %222 = vmatpush3.msra.mxu0 %v60_v7 }
  0x2a   :  { %223 = vmatprep.subr.mxu0 %v329_v1  ;;  %p307_p0 = pnand %p306_p13, %p300_p10 }
  0x2b   :  { %224 = vmatpush3.msra.mxu0 %v59_v8 }
  0x2c   :  { %225 = vmatprep.subr.mxu0 %v329_v1 }
  0x2d   :  { %226 = vmatpush3.msra.mxu0 %v58_v9 }
  0x2e   :  { %227 = vmatprep.subr.mxu0 %v329_v1 }
  0x2f   :  { %228 = vmatpush3.msra.mxu0 %v57_v10 }
  0x30   :  { %229 = vmatprep.subr.mxu0 %v329_v1 }
  0x31   :  { %230 = vmatpush3.msra.mxu0 %v56_v11 }
  0x32   :  { %231 = vmatprep.subr.mxu0 %v329_v1 }
  0x33   :  { %232 = vmatpush3.msra.mxu0 %v55_v12 }
  0x34   :  { %233 = vmatprep.subr.mxu0 %v329_v1 }
  0x35   :  { %234 = vmatpush3.msra.mxu0 %v54_v13 }
  0x36   :  { %235 = vmatprep.subr.mxu0 %v329_v1 }
  0x37   :  { %236 = vmatpush3.msra.mxu0 %v53_v14 }
  0x38   :  { %237 = vmatprep.subr.mxu0 %v329_v1 }
  0x39   :  { %238 = vmatpush3.msra.mxu0 %v52_v15 }
  0x3a   :  { %239 = vmatprep.subr.mxu0 %v329_v1 }
  0x3b   :  { %240 = vmatpush3.msra.mxu0 %v51_v16 }
  0x3c   :  { %241 = vmatprep.subr.mxu0 %v329_v1 }
  0x3d   :  { %242 = vmatpush3.msra.mxu0 %v50_v17 }
  0x3e   :  { %244 = vmatmul.mubr.f32.vlgmr.msra.gmra.mxu0 %v49_v18 }
  0xfe   :  { %v139_v20 = vpop.f32.mrf.mxu0 }
  0xff   :  { %v140_v21 = vadd.f32 %v190_v19, %v139_v20 }
 0x100   :  { %v245_v22 = vpop.f32.mrf.mxu0 }
 0x101   :  { %v143_v24 = vmax.f32 %v140_v21, 0.0 }
 0x103   :  { %v151_v25 = vmul.f32 %v191_v23, %v143_v24 }
 0x105   :  { %152 = vadd.xlane.f32.xlu0 %v151_v25 }
 0x18e   :  { %v153_v28 = vpop.xlane.xlu0 %152 }
 0x18f   :  { %v161_v29 = vadd.f32 %v192_v27, %v153_v28 }
 0x191   :  { %v193_v30 = vmul.f32 -1.442695, %v161_v29 }
 0x193   :  { %255 = vpow2.f32 %v193_v30 }
 0x1a0   :  { %v256_v31 = vpop.eup %255 }
 0x1a1   :  { %v165_v32 = vadd.f32 1.0, %v256_v31 }
 0x1a3   :  { %257 = vrcp.f32 %v165_v32 }
 0x1b0   :  { %v258_v33 = vpop.eup %257 }
 0x1b1   :  { %170 = vperm.xlu0 %254, %v258_v33  }
 0x22c   :  { %v171_v34 = vpop.permute.xlu0 %170 }
 0x22d   :  { %173 = vst [vmem:[#allocation8] sm:$0xff] %v171_v34 }
 0x22e   :  { %310 = shalt.err (!%p307_p0)
}
 0x22f   :  { %183 = dma.vmem_to_hbm [thread:$0]  %s181_s8, 128, %s386_s5, [#allocation5]  }
 0x230   :  { %323 = dma.done.wait [#allocation5], 128  }
 0x231   :  { %324 = vsyncadd [#allocation5], 4294967168 }
 0x232   :  { %187 = vsyncpa [#allocation4], 1 }
 0x233   :  { %188 = vsyncpa [#allocation7], 1 }
 0x234   :  { %189 = vsyncpa [#allocation5], 1 }

</bundles_post_ra>
